<compile_context>
chip_gen: v5e
topology: v5e:2x2
jax: 0.10.0
libtpu: 0.0.40
codegen_flags: <defaults>
</compile_context>

<pallas_src>
import functools

import jax
import jax.numpy as jnp
from jax.experimental import pallas as pl
from jax.experimental.pallas import tpu as pltpu


def _isomax_kernel(logits_ref, targets_ref, out_ref, *,
                   entropic_scale, n_valid, needs_mask):
    """One (batch, pixel-row-tile) block.

    logits_ref : (1, C, Tn, L) input dtype
    targets_ref: (1, Tn, L)    int32
    out_ref    : (1, 1, 1, 1)  f32 partial sum of -log(p_target + 1e-12)
    """
    C = logits_ref.shape[1]
    t = targets_ref[0]                                        # (Tn, L) int32

    # Pass 1: running max of the scaled logits over the class axis.
    m = logits_ref[0, 0].astype(jnp.float32) * entropic_scale
    for c in range(1, C):
        sc = logits_ref[0, c].astype(jnp.float32) * entropic_scale
        m = jnp.maximum(m, sc)

    # Pass 2: softmax denominator + target-class scaled logit.
    # All temporaries are (Tn, L); nothing of size (C, Tn, L) is materialized.
    denom = jnp.zeros_like(m)
    s_t = jnp.zeros_like(m)
    for c in range(C):
        sc = logits_ref[0, c].astype(jnp.float32) * entropic_scale
        denom = denom + jnp.exp(sc - m)
        s_t = jnp.where(t == c, sc, s_t)

    p_t = jnp.exp(s_t - m) / denom                            # (Tn, L)
    loss = -jnp.log(p_t + 1e-12)                              # (Tn, L)

    if needs_mask:
        # Only compiled in when the last tile is ragged or N was padded.
        tile_rows, lane = loss.shape
        n = pl.program_id(1)
        row = jax.lax.broadcasted_iota(jnp.int32, loss.shape, 0)
        lni = jax.lax.broadcasted_iota(jnp.int32, loss.shape, 1)
        pix = (n * tile_rows + row) * lane + lni
        loss = jnp.where(pix < n_valid, loss, 0.0)

    out_ref[...] = jnp.sum(loss).reshape(1, 1, 1, 1)


def _vmem_capacity_bytes():
    try:
        cap = getattr(pltpu.get_tpu_info(), "vmem_capacity_bytes", None)
        if cap:
            return int(cap)
    except Exception:
        pass
    return 64 * 1024 * 1024  # conservative default (v7x per-core VMEM)


def isomax_plus_loss_second_part(logits, targets, entropic_scale=10.0):
    """logits: (B, C, H, W) float (f32/bf16), targets: (B, H, W) int -> scalar f32 loss."""
    B, C, H, W = logits.shape
    N = H * W
    targets = targets.astype(jnp.int32)

    # ---- Lane-dense pixel layout: (B, C, N//L, L), L a multiple of 128. ----
    lane = None
    for cand in (1024, 512, 256, 128):
        if N % cand == 0:
            lane = cand
            break
    if lane is None:
        # Rare fallback: pad the flattened pixel axis to a multiple of 128.
        # Padded pixels get logits=0 / target=0 and are masked out in-kernel.
        lane = 128
        n_padded = pl.cdiv(N, lane) * lane
        logits_f = jnp.pad(logits.reshape(B, C, N),
                           ((0, 0), (0, 0), (0, n_padded - N)))
        targets_f = jnp.pad(targets.reshape(B, N), ((0, 0), (0, n_padded - N)))
    else:
        n_padded = N
        logits_f = logits.reshape(B, C, N)
        targets_f = targets.reshape(B, N)

    n_rows = n_padded // lane
    logits_f = logits_f.reshape(B, C, n_rows, lane)
    targets_f = targets_f.reshape(B, n_rows, lane)

    # ---- Generation-aware tile sizing (VMEM budget counts real footprint). --
    vmem_cap = _vmem_capacity_bytes()
    budget = int(vmem_cap * 0.45)          # leave room for double-buffering etc.
    itemsize = jnp.dtype(logits.dtype).itemsize
    # Per row of `lane` pixels: 2x double-buffered logits + 2x targets (int32)
    # + ~8 live f32 per-pixel temporaries (m, denom, s_t, sc, exp, p_t, ...).
    per_row = lane * (2 * C * itemsize + 2 * 4 + 8 * 4)
    tile_max = max(1, budget // per_row)

    if tile_max >= n_rows:
        tile_rows = n_rows                          # single block (full extent)
    else:
        # Spread rows evenly over the blocks so the tail tile isn't mostly
        # padding, then round to a sublane multiple of 8.
        n_blocks_t = pl.cdiv(n_rows, tile_max)
        tile_rows = pl.cdiv(n_rows, n_blocks_t)
        tile_rows = ((tile_rows + 7) // 8) * 8
        if tile_rows >= n_rows:
            tile_rows = n_rows
    tile_rows = int(tile_rows)
    n_blocks = int(pl.cdiv(n_rows, tile_rows))
    needs_mask = (n_padded != N) or (n_rows % tile_rows != 0)

    kernel = functools.partial(
        _isomax_kernel,
        entropic_scale=float(entropic_scale),
        n_valid=int(N),
        needs_mask=bool(needs_mask),
    )

    cost = pl.CostEstimate(
        flops=int(8 * B * C * n_padded),
        transcendentals=int(B * n_padded * (C + 2)),
        bytes_accessed=int(logits.size * itemsize + targets.size * 4
                           + B * n_blocks * 4),
    )

    partials = pl.pallas_call(
        kernel,
        out_shape=jax.ShapeDtypeStruct((B, n_blocks, 1, 1), jnp.float32),
        grid_spec=pltpu.PrefetchScalarGridSpec(
            num_scalar_prefetch=0,
            grid=(B, n_blocks),
            in_specs=[
                pl.BlockSpec((1, C, tile_rows, lane), lambda b, n: (b, 0, n, 0)),
                pl.BlockSpec((1, tile_rows, lane), lambda b, n: (b, n, 0)),
            ],
            out_specs=pl.BlockSpec((1, 1, 1, 1), lambda b, n: (b, n, 0, 0)),
        ),
        compiler_params=pltpu.CompilerParams(
            dimension_semantics=("parallel", "parallel"),
            vmem_limit_bytes=int(vmem_cap * 3 // 4),
        ),
        cost_estimate=cost,
    )(logits_f, targets_f)

    return jnp.sum(partials) / jnp.float32(B * N)


def _reference_loss(logits, targets, entropic_scale=10.0):
    B, C, H, W = logits.shape
    rows = jnp.transpose(logits, (0, 2, 3, 1)).reshape(-1, C).astype(jnp.float32)
    t = targets.reshape(-1)
    probs = jax.nn.softmax(entropic_scale * rows, axis=1)
    p_t = probs[jnp.arange(t.shape[0]), t]
    return -jnp.mean(jnp.log(p_t + 1e-12))


if __name__ == "__main__":
    key = jax.random.PRNGKey(0)
    k1, k2 = jax.random.split(key)

    B, C, H, W = 2, 4, 16, 16
    logits = jax.random.normal(k1, (B, C, H, W), dtype=jnp.float32)
    targets = jax.random.randint(k2, (B, H, W), 0, C, dtype=jnp.int32)

    loss = isomax_plus_loss_second_part(logits, targets, entropic_scale=10.0)
    loss = jax.block_until_ready(loss)

    ref = jax.block_until_ready(_reference_loss(logits, targets, entropic_scale=10.0))
    assert jnp.allclose(loss, ref, rtol=1e-5, atol=1e-5), (loss, ref)

    print("KERNEL_OK")
</pallas_src>

<mosaic_0001>
module attributes {stable_mosaic.version = 11 : i64} {
  func.func @_isomax_kernel(%arg0: i32, %arg1: i32, %arg2: memref<1x4x1x256xf32, #tpu.memory_space<vmem>>, %arg3: memref<1x1x256xi32, #tpu.memory_space<vmem>>, %arg4: memref<1x1x1x1xf32, #tpu.memory_space<vmem>>) attributes {dimension_semantics = [#tpu.dimension_semantics<parallel>, #tpu.dimension_semantics<parallel>], iteration_bounds = array<i64: 2, 1>, scalar_prefetch = 0 : i64, scratch_operands = 0 : i64, tpu.core_type = #tpu.core_type<tc>, window_params = [{transform_indices = @transform_0, window_bounds = array<i64: 1, 4, 1, 256>}, {transform_indices = @transform_1, window_bounds = array<i64: 1, 1, 256>}, {transform_indices = @transform_2, window_bounds = array<i64: 1, 1, 1, 1>}]} {
    %c0 = arith.constant 0 : index
    %c0_0 = arith.constant 0 : index
    %c0_1 = arith.constant 0 : index
    %0 = vector.load %arg3[%c0, %c0_0, %c0_1] : memref<1x1x256xi32, #tpu.memory_space<vmem>>, vector<1x1x256xi32>
    %1 = vector.shape_cast %0 : vector<1x1x256xi32> to vector<1x256xi32>
    %c0_2 = arith.constant 0 : index
    %c0_3 = arith.constant 0 : index
    %c0_4 = arith.constant 0 : index
    %c0_5 = arith.constant 0 : index
    %2 = vector.load %arg2[%c0_2, %c0_3, %c0_4, %c0_5] : memref<1x4x1x256xf32, #tpu.memory_space<vmem>>, vector<1x1x1x256xf32>
    %3 = vector.shape_cast %2 : vector<1x1x1x256xf32> to vector<1x256xf32>
    %cst = arith.constant 1.000000e+01 : f32
    %4 = vector.broadcast %cst : f32 to vector<1x256xf32>
    %5 = arith.mulf %3, %4 : vector<1x256xf32>
    %c0_6 = arith.constant 0 : index
    %c1 = arith.constant 1 : index
    %c0_7 = arith.constant 0 : index
    %c0_8 = arith.constant 0 : index
    %6 = vector.load %arg2[%c0_6, %c1, %c0_7, %c0_8] : memref<1x4x1x256xf32, #tpu.memory_space<vmem>>, vector<1x1x1x256xf32>
    %7 = vector.shape_cast %6 : vector<1x1x1x256xf32> to vector<1x256xf32>
    %cst_9 = arith.constant 1.000000e+01 : f32
    %8 = vector.broadcast %cst_9 : f32 to vector<1x256xf32>
    %9 = arith.mulf %7, %8 : vector<1x256xf32>
    %10 = arith.maximumf %5, %9 : vector<1x256xf32>
    %c0_10 = arith.constant 0 : index
    %c2 = arith.constant 2 : index
    %c0_11 = arith.constant 0 : index
    %c0_12 = arith.constant 0 : index
    %11 = vector.load %arg2[%c0_10, %c2, %c0_11, %c0_12] : memref<1x4x1x256xf32, #tpu.memory_space<vmem>>, vector<1x1x1x256xf32>
    %12 = vector.shape_cast %11 : vector<1x1x1x256xf32> to vector<1x256xf32>
    %cst_13 = arith.constant 1.000000e+01 : f32
    %13 = vector.broadcast %cst_13 : f32 to vector<1x256xf32>
    %14 = arith.mulf %12, %13 : vector<1x256xf32>
    %15 = arith.maximumf %10, %14 : vector<1x256xf32>
    %c0_14 = arith.constant 0 : index
    %c3 = arith.constant 3 : index
    %c0_15 = arith.constant 0 : index
    %c0_16 = arith.constant 0 : index
    %16 = vector.load %arg2[%c0_14, %c3, %c0_15, %c0_16] : memref<1x4x1x256xf32, #tpu.memory_space<vmem>>, vector<1x1x1x256xf32>
    %17 = vector.shape_cast %16 : vector<1x1x1x256xf32> to vector<1x256xf32>
    %cst_17 = arith.constant 1.000000e+01 : f32
    %18 = vector.broadcast %cst_17 : f32 to vector<1x256xf32>
    %19 = arith.mulf %17, %18 : vector<1x256xf32>
    %20 = arith.maximumf %15, %19 : vector<1x256xf32>
    %cst_18 = arith.constant 0.000000e+00 : f32
    %21 = vector.broadcast %cst_18 : f32 to vector<1x256xf32>
    %cst_19 = arith.constant 0.000000e+00 : f32
    %22 = vector.broadcast %cst_19 : f32 to vector<1x256xf32>
    %c0_20 = arith.constant 0 : index
    %c0_21 = arith.constant 0 : index
    %c0_22 = arith.constant 0 : index
    %c0_23 = arith.constant 0 : index
    %23 = vector.load %arg2[%c0_20, %c0_21, %c0_22, %c0_23] : memref<1x4x1x256xf32, #tpu.memory_space<vmem>>, vector<1x1x1x256xf32>
    %24 = vector.shape_cast %23 : vector<1x1x1x256xf32> to vector<1x256xf32>
    %cst_24 = arith.constant 1.000000e+01 : f32
    %25 = vector.broadcast %cst_24 : f32 to vector<1x256xf32>
    %26 = arith.mulf %24, %25 : vector<1x256xf32>
    %27 = arith.subf %26, %20 : vector<1x256xf32>
    %28 = math.exp %27 : vector<1x256xf32>
    %29 = arith.addf %21, %28 : vector<1x256xf32>
    %c0_i32 = arith.constant 0 : i32
    %30 = vector.broadcast %c0_i32 : i32 to vector<1x256xi32>
    %31 = arith.cmpi eq, %1, %30 : vector<1x256xi32>
    %32 = arith.select %31, %26, %22 : vector<1x256xi1>, vector<1x256xf32>
    %c0_25 = arith.constant 0 : index
    %c1_26 = arith.constant 1 : index
    %c0_27 = arith.constant 0 : index
    %c0_28 = arith.constant 0 : index
    %33 = vector.load %arg2[%c0_25, %c1_26, %c0_27, %c0_28] : memref<1x4x1x256xf32, #tpu.memory_space<vmem>>, vector<1x1x1x256xf32>
    %34 = vector.shape_cast %33 : vector<1x1x1x256xf32> to vector<1x256xf32>
    %cst_29 = arith.constant 1.000000e+01 : f32
    %35 = vector.broadcast %cst_29 : f32 to vector<1x256xf32>
    %36 = arith.mulf %34, %35 : vector<1x256xf32>
    %37 = arith.subf %36, %20 : vector<1x256xf32>
    %38 = math.exp %37 : vector<1x256xf32>
    %39 = arith.addf %29, %38 : vector<1x256xf32>
    %c1_i32 = arith.constant 1 : i32
    %40 = vector.broadcast %c1_i32 : i32 to vector<1x256xi32>
    %41 = arith.cmpi eq, %1, %40 : vector<1x256xi32>
    %42 = arith.select %41, %36, %32 : vector<1x256xi1>, vector<1x256xf32>
    %c0_30 = arith.constant 0 : index
    %c2_31 = arith.constant 2 : index
    %c0_32 = arith.constant 0 : index
    %c0_33 = arith.constant 0 : index
    %43 = vector.load %arg2[%c0_30, %c2_31, %c0_32, %c0_33] : memref<1x4x1x256xf32, #tpu.memory_space<vmem>>, vector<1x1x1x256xf32>
    %44 = vector.shape_cast %43 : vector<1x1x1x256xf32> to vector<1x256xf32>
    %cst_34 = arith.constant 1.000000e+01 : f32
    %45 = vector.broadcast %cst_34 : f32 to vector<1x256xf32>
    %46 = arith.mulf %44, %45 : vector<1x256xf32>
    %47 = arith.subf %46, %20 : vector<1x256xf32>
    %48 = math.exp %47 : vector<1x256xf32>
    %49 = arith.addf %39, %48 : vector<1x256xf32>
    %c2_i32 = arith.constant 2 : i32
    %50 = vector.broadcast %c2_i32 : i32 to vector<1x256xi32>
    %51 = arith.cmpi eq, %1, %50 : vector<1x256xi32>
    %52 = arith.select %51, %46, %42 : vector<1x256xi1>, vector<1x256xf32>
    %c0_35 = arith.constant 0 : index
    %c3_36 = arith.constant 3 : index
    %c0_37 = arith.constant 0 : index
    %c0_38 = arith.constant 0 : index
    %53 = vector.load %arg2[%c0_35, %c3_36, %c0_37, %c0_38] : memref<1x4x1x256xf32, #tpu.memory_space<vmem>>, vector<1x1x1x256xf32>
    %54 = vector.shape_cast %53 : vector<1x1x1x256xf32> to vector<1x256xf32>
    %cst_39 = arith.constant 1.000000e+01 : f32
    %55 = vector.broadcast %cst_39 : f32 to vector<1x256xf32>
    %56 = arith.mulf %54, %55 : vector<1x256xf32>
    %57 = arith.subf %56, %20 : vector<1x256xf32>
    %58 = math.exp %57 : vector<1x256xf32>
    %59 = arith.addf %49, %58 : vector<1x256xf32>
    %c3_i32 = arith.constant 3 : i32
    %60 = vector.broadcast %c3_i32 : i32 to vector<1x256xi32>
    %61 = arith.cmpi eq, %1, %60 : vector<1x256xi32>
    %62 = arith.select %61, %56, %52 : vector<1x256xi1>, vector<1x256xf32>
    %63 = arith.subf %62, %20 : vector<1x256xf32>
    %64 = math.exp %63 : vector<1x256xf32>
    %65 = arith.divf %64, %59 : vector<1x256xf32>
    %cst_40 = arith.constant 9.99999996E-13 : f32
    %66 = vector.broadcast %cst_40 : f32 to vector<1x256xf32>
    %67 = arith.addf %65, %66 : vector<1x256xf32>
    %68 = math.log %67 : vector<1x256xf32>
    %cst_41 = arith.constant 0.000000e+00 : f32
    %69 = vector.broadcast %cst_41 : f32 to vector<1x256xf32>
    %70 = arith.subf %69, %68 : vector<1x256xf32>
    %71 = vector.shape_cast %70 : vector<1x256xf32> to vector<1x1x256xf32>
    %cst_42 = arith.constant dense<0.000000e+00> : vector<1xf32>
    %72 = vector.multi_reduction <add>, %71, %cst_42 [1, 2] : vector<1x1x256xf32> to vector<1xf32>
    %73 = vector.shape_cast %72 : vector<1xf32> to vector<1x1x1xf32>
    %74 = vector.extract %73[0, 0, 0] : f32 from vector<1x1x1xf32>
    %75 = vector.broadcast %74 : f32 to vector<1x1x1x1xf32>
    %c0_43 = arith.constant 0 : index
    %c0_44 = arith.constant 0 : index
    %c0_45 = arith.constant 0 : index
    %c0_46 = arith.constant 0 : index
    %76 = vector.load %arg4[%c0_43, %c0_44, %c0_45, %c0_46] : memref<1x1x1x1xf32, #tpu.memory_space<vmem>>, vector<1x1x1x1xf32>
    tpu.vector_store %arg4[%c0_43, %c0_44, %c0_45, %c0_46], %75 {strides = array<i32>} : memref<1x1x1x1xf32, #tpu.memory_space<vmem>>, vector<1x1x1x1xf32>,
    return
  }
  func.func @transform_0(%arg0: i32, %arg1: i32) -> (i32, i32, i32, i32) {
    %c0_i32 = arith.constant 0 : i32
    %c0_i32_0 = arith.constant 0 : i32
    %c0_i32_1 = arith.constant 0 : i32
    return %arg0, %c0_i32, %arg1, %c0_i32_0 : i32, i32, i32, i32
  }
  func.func @transform_1(%arg0: i32, %arg1: i32) -> (i32, i32, i32) {
    %c0_i32 = arith.constant 0 : i32
    %c0_i32_0 = arith.constant 0 : i32
    return %arg0, %arg1, %c0_i32 : i32, i32, i32
  }
  func.func @transform_2(%arg0: i32, %arg1: i32) -> (i32, i32, i32, i32) {
    %c0_i32 = arith.constant 0 : i32
    %c0_i32_0 = arith.constant 0 : i32
    %c0_i32_1 = arith.constant 0 : i32
    return %arg0, %arg1, %c0_i32, %c0_i32_0 : i32, i32, i32, i32
  }
}

</mosaic_0001>

<bundles_post_ra>
// kernel: tpu_custom_call.1
= control target key start
LH: loop header
LB: loop body
LE: loop exit
PB: predicated region body
PF: predicated region fallthrough
CT: control target
= control target key end

     0   :  { %7 = vsyncpa [#allocation3], 0  ;;  %s745_s0 = inlined_call_operand.hbm [shape: f32[2,4,1,256], index: 0, kind: input, shape index: {}]   ;;  %s746_s1 = inlined_call_operand.hbm [shape: s32[2,1,256], index: 1, kind: input, shape index: {}]   ;;  %s747_s2 = inlined_call_operand.vmem [shape: f32[2,1,1,1], index: 2, kind: output, shape index: {}]  }
   0x1   :  { %9 = vsyncpa [#allocation3 + $0x1], 0 }
   0x2   :  { %10 = vsyncpa [#allocation5], 0 }
   0x3   :  { %12 = vsyncpa [#allocation5 + $0x1], 0  ;;  %s641_s9 = smov 0   ;;  %s643_s10 = smov 0  }
   0x4   :  { %s645_s11 = smov 0   ;;  %s647_s12 = smov 0  }
   0x5   :  { %s649_s13 = smov 0   ;;  %s651_s14 = smov 0  }
   0x6 LB: > { %s414_s15 = sadd.s32 4294967295, %s622_s14   ;;  %s30_s16 = sadd.s32 1, %s618_s13  ;;  %s622_s14 = sphi %s651_s14, %s18_s14   ;;  %s618_s13 = sphi %s649_s13, %s755_s13   ;;  %s614_s12 = sphi %s647_s12, %s754_s12   ;;  %s610_s11 = sphi %s645_s11, %s753_s11   ;;  %s606_s10 = sphi %s643_s10, %s752_s10   ;;  %s602_s9 = sphi %s641_s9, %s751_s9  }
   0x7   : > { %p32_p0 = scmp.ge.s32.totalorder %s30_s16, 2  ;;  %s39_s17 = sadd.s32 1, %s610_s11 }
   0x8   : > { %p46_p1 = scmp.ne.s32.totalorder %s610_s11, %s606_s10  ;;  %p47_p2 = scmp.eq.s32.totalorder %s622_s14, 0 }
   0x9   : > { %s757_s16 = smov (%p32_p0, %s30_s16), 0  ;;  %p52_p4 = scmp.ne.s32.totalorder %s606_s10, %s602_s9 }
   0xa   : > { %p677_p3 = por %p47_p2, %p46_p1  ;;  %s34_s19 = ssub.s32 %s618_s13, %s757_s16 }
   0xb   : > { %p53_p5 = scmp.eq.s32.totalorder %s414_s15, 0  ;;  %p37_p6 = scmp.eq.s32.totalorder %s34_s19, 0 }
   0xc   : > { %p443_p8 = scmp.lt.s32.totalorder %s622_s14, 2  ;;  %s132_s22 = sand.u32 1, %s610_s11  }
   0xd   : > { %p684_p7 = por %p53_p5, %p52_p4  ;;  %s419_s23 = sshll.u32 %s618_s13, 3 }
   0xe   : > { %s690_s21 = scalar_select %p37_p6, %s610_s11, %s39_s17  }
   0xf   : > { %s418_s24 = sshll.u32 %s132_s22, 3  ;;  %s142_s27 = scalar_lea.hbm %s745_s0, %s419_s23 }
  0x10   : > { %s143_s28 = sshll.u32 %s142_s27, 4  ;;  %s136_s29 = scalar_lea.vmem [#allocation2], %s418_s24  ;;  %s144_s28 = int_to_ptr.hbm [resolvable:$true] %s143_s28 }
  0x11   : > { %s145_s30 = sshll.u32 %s136_s29, 4  ;;  %p699_p9 = pnand %p443_p8, %p677_p3  ;;  %s146_s30 = int_to_ptr.vmem [resolvable:$true] %s145_s30 }
  0x12   : > { %p422_p10 = scmp.ge.s32.totalorder %s622_s14, 1  ;;  %p174_p11 = scmp.lt.s32.totalorder %s622_s14, 3 }
  0x13   : > { %s133_s4 = scalar_lea.sflag [#allocation3], %s132_s22  ;;  %s624_s5 = smov 32  }
  0x14   : > { %s625_s6 = smov 2   ;;  %p175_p12 = pnand %p422_p10, %p174_p11 }
  0x15   : > { %439 = dma.hbm_to_vmem [thread:$0]  (!%p699_p9), %s144_s28, 128, %s146_s30, %s133_s4, %s624_s5, %s624_s5, %s625_s6  }
  0x16   : > { %s420_s7 = sshll.u32 %s132_s22, 1  ;;  %s421_s8 = sshll.u32 %s618_s13, 1 }
  0x17   : > { %s165_s17 = scalar_lea.hbm %s746_s1, %s421_s8  ;;  %s159_s19 = scalar_lea.vmem [#allocation4], %s420_s7 }
  0x18   : > { %s167_s18 = sshll.u32 %s165_s17, 4  ;;  %s169_s23 = sshll.u32 %s159_s19, 4  ;;  %s168_s18 = int_to_ptr.hbm [resolvable:$true] %s167_s18  ;;  %s170_s23 = int_to_ptr.vmem [resolvable:$true] %s169_s23 }
  0x19   : > { %s156_s24 = scalar_lea.sflag [#allocation5], %s132_s22  ;;  %178 = sbr.rel (%p175_p12) target bundleno = 278 (0x116), region = 28 }
  0x1a   : > { %442 = dma.hbm_to_vmem [thread:$0]  (!%p699_p9), %s168_s18, 32, %s170_s23, %s156_s24  }
  0x1b   : > { %s180_s25 = sand.u32 (!%p175_p12), 1, %s606_s10  }
  0x1c   : > { %s423_s26 = sshll.u32 (!%p175_p12), %s180_s25, 3  ;;  %s181_s27 = scalar_lea.sflag (!%p175_p12), [#allocation3], %s180_s25 }
  0x1d   : > { %s184_s28 = scalar_lea.vmem (!%p175_p12), [#allocation2], %s423_s26 }
  0x1e   : > { %593 = dma.done.wait (%p684_p7), %s181_s27, 128  }
  0x1f   : > { %595 = vsyncadd (%p684_p7), %s181_s27, 4294967168  ;;  %s424_s29 = sshll.u32 %s180_s25, 1  ;;  %s191_s30 = scalar_lea.sflag [#allocation5], %s180_s25 }
  0x20   : > { %s194_s4 = scalar_lea.vmem [#allocation4], %s424_s29 }
  0x21   : > { %597 = dma.done.wait (%p684_p7), %s191_s30, 32  }
  0x22   : > { %599 = vsyncadd (%p684_p7), %s191_s30, 4294967264  ;;  %v229_v0 = vld [vmem:[%s184_s28] sm:$0x3]  ;;  %v425_v1 = vld [vmem:[%s184_s28 + $0x2] sm:$0x3]  ;;  %vm294_vm8 = vcmask 1040384  }
  0x23   : > { %v230_v2 = vmul.f32 10.0, %v229_v0  ;;  %v233_v3 = vmul.f32 10.0, %v425_v1  ;;  %v426_v4 = vld [vmem:[%s184_s28 + $0x4] sm:$0x3]  ;;  %v427_v5 = vld [vmem:[%s184_s28 + $0x6] sm:$0x3] }
  0x24   : > { %v237_v6 = vmul.f32 10.0, %v426_v4  ;;  %v241_v8 = vmul.f32 10.0, %v427_v5  ;;  %v228_v11 = vld [vmem:[%s194_s4] sm:$0x3]  ;;  %p222_p13 = scmp.lt.s32.totalorder %s614_s12, 1  ;;  %vm308_vm9 = vcmask 0  }
  0x25   : > { %v234_v7 = vmax.f32 %v230_v2, %v233_v3  ;;  %vm247_vm0 = vcmp.eq.s32.totalorder %v228_v11, 0  ;;  %vm253_vm1 = vcmp.eq.s32.totalorder %v228_v11, 1  ;;  %vm259_vm2 = vcmp.eq.s32.totalorder %v228_v11, 2 }
  0x26   : > { %v248_v20 = vsel %vm247_vm0, %v230_v2, 0.0  ;;  %vm265_vm3 = vcmp.eq.s32.totalorder %v228_v11, 3  ;;  %s759_s12 = smov (!%p222_p13, %s614_s12), 1 }
  0x27   : > { %v238_v9 = vmax.f32 %v234_v7, %v237_v6  ;;  %v254_v21 = vsel %vm253_vm1, %v233_v3, %v248_v20  ;;  %s227_s3 = scalar_lea.vmem %s747_s2, %s759_s12 }
  0x28   : > { %v260_v26 = vsel %vm259_vm2, %v237_v6, %v254_v21 }
  0x29   : > { %v242_v10 = vmax.f32 %v238_v9, %v241_v8  ;;  %v266_v29 = vsel %vm265_vm3, %v241_v8, %v260_v26 }
  0x2b   : > { %v243_v12 = vsub.f32 %v230_v2, %v242_v10  ;;  %v249_v13 = vsub.f32 %v233_v3, %v242_v10  ;;  %v255_v14 = vsub.f32 %v237_v6, %v242_v10  ;;  %v261_v15 = vsub.f32 %v241_v8, %v242_v10 }
  0x2c   : > { %v267_v31 = vsub.f32 %v266_v29, %v242_v10 }
  0x2d   : > { %v244_v16 = vmul.f32 1.442695, %v243_v12  ;;  %v250_v17 = vmul.f32 1.442695, %v249_v13  ;;  %v256_v18 = vmul.f32 1.442695, %v255_v14 }
  0x2e   : > { %v262_v19 = vmul.f32 1.442695, %v261_v15  ;;  %v268_v32 = vmul.f32 1.442695, %v267_v31 }
  0x2f   : > { %494 = vpow2.f32 %v244_v16 }
  0x30   : > { %496 = vpow2.f32 %v250_v17 }
  0x31   : > { %498 = vpow2.f32 %v256_v18 }
  0x32   : > { %500 = vpow2.f32 %v262_v19 }
  0x35   : > { %v495_v22 = vpop.eup %494 }
  0x36   : > { %v497_v23 = vpop.eup %496 }
  0x37   : > { %v499_v24 = vpop.eup %498  ;;  %v252_v25 = vadd.f32 %v497_v23, %v495_v22 }
  0x38   : > { %v501_v27 = vpop.eup %500 }
  0x39   : > { %v258_v28 = vadd.f32 %v499_v24, %v252_v25 }
  0x3b   : > { %v264_v30 = vadd.f32 %v501_v27, %v258_v28 }
  0x3d   : > { %502 = vrcp.f32 %v264_v30  ;;  %v281_v35 = vand.u32 2147483648, %v264_v30  ;;  %vm275_vm4 = vweird.f32 %v264_v30  ;;  %v279_v37 = vand.u32 2147483647, %v264_v30 }
  0x3e   : > { %504 = vpow2.f32 %v268_v32 }
  0x3f   : > { %v282_v39 = vor.u32 1.1754944e-38, %v281_v35  ;;  %vm280_vm7 = vcmp.eq.f32.partialorder %v279_v37, 8.507059e+37 }
  0x43   : > { %v503_v33 = vpop.eup %502 }
  0x44   : > { %v271_v34 = vmul.f32 %v503_v33, %v264_v30  ;;  %vm276_vm5 = vweird.f32 %v503_v33  ;;  %v505_v41 = vpop.eup %504 }
  0x45   : > { %vm277_vm6 = vmor %vm275_vm4, %vm276_vm5 }
  0x46   : > { %v272_v36 = vsub.f32 1.0, %v271_v34 }
  0x48   : > { %v273_v38 = vmul.f32 %v503_v33, %v272_v36 }
  0x4a   : > { %v274_v40 = vadd.f32 %v503_v33, %v273_v38 }
  0x4c   : > { %v278_v42 = vsel %vm277_vm6, %v503_v33, %v274_v40 }
  0x4d   : > { %v283_v43 = vsel %vm280_vm7, %v282_v39, %v278_v42 }
  0x4e   : > { %v284_v44 = vmul.f32 %v505_v41, %v283_v43 }
  0x50   : > { %v285_v45 = vadd.f32 1e-12, %v284_v44 }
  0x52   : > { %506 = vlog2.f32 %v285_v45 }
  0x58   : > { %v507_v46 = vpop.eup %506 }
  0x59   : > { %v287_v47 = vmul.f32 0.6931472, %v507_v46 }
  0x5b   : > { %v288_v48 = vsub.f32 0.0, %v287_v47 }
  0x5d   : > { %v290_v49 = vperm.slane %v288_v48, 0  ;;  %v291_v50 = vperm.slane %v288_v48, 1 }
  0x5f   : > { %v295_v51 = vsel %vm294_vm8, %v290_v49, 0.0  ;;  %v296_v52 = vsel %vm294_vm8, %v291_v50, 0.0 }
  0x60   : > { %v297_v53 = vadd.f32 %v296_v52, %v295_v51 }
  0x62   : > { %298 = vadd.xlane.f32.xlu0 %v297_v53 }
  0xd5   : > { %v299_v54 = vpop.xlane.xlu0 %298 }
  0xd6   : > { %v300_v55 = vrot.slane %v299_v54, 4 }
  0xd8   : > { %v301_v56 = vadd.f32 %v300_v55, %v299_v54 }
  0xda   : > { %v302_v57 = vrot.slane %v301_v56, 2 }
  0xdc   : > { %v303_v58 = vadd.f32 %v302_v57, %v301_v56 }
  0xde   : > { %v304_v59 = vrot.slane %v303_v58, 1 }
  0xe0   : > { %v305_v60 = vadd.f32 %v304_v59, %v303_v58 }
  0xe2   : > { %430 = vpush %v305_v60 }
 0x113   : > { %s431_s5 = spop %430 }
 0x114   : > { %v307_v61 = vstv %s431_s5 }
 0x115   : > { %309 = vst.msk [vmem:[%s227_s3] sm:$0x1] %vm308_vm9, %v307_v61 }
 0x116 PF: > { %s18_s14 = sadd.s32 1, %s622_s14   ;;  %s751_s9 = smov %s606_s10 }
 0x117   : > { %p15_p0 = scmp.ge.s32.totalorder %s18_s14, 4   ;;  %s752_s10 = smov %s610_s11 }
 0x118   : > { %s753_s11 = smov %s690_s21  ;;  %s754_s12 = smov %s618_s13 }
 0x119   : > { %s755_s13 = smov %s757_s16  ;;  %17 = sbr.rel (!%p15_p0) target bundleno = 6 (0x6), region = 84 }
 0x11e   :  { %333 = vsyncpa [#allocation3], 1 }
 0x11f   :  { %335 = vsyncpa [#allocation3 + $0x1], 1 }
 0x120   :  { %336 = vsyncpa [#allocation5], 1 }
 0x121   :  { %338 = vsyncpa [#allocation5 + $0x1], 1 }

</bundles_post_ra>
